<compile_context>
chip_gen: v5e
topology: v5e:2x2
jax: 0.10.0
libtpu: 0.0.40
codegen_flags: <defaults>
</compile_context>

<pallas_src>
import jax
import jax.numpy as jnp
from jax import lax
from jax.experimental import pallas as pl
from jax.experimental.pallas import tpu as pltpu

N_MODELS = 4
HIDDEN_DIM = 16
TOP_K = 2

CHUNK = 512          # lanes per inner-loop step (bounds vreg live ranges)
TILE_B_MAX = 16384   # max batch lanes per grid step (amortizes grid-step overhead)


def gating_kernel(x_ref, w1_ref, b1_ref, w2_ref, b2_ref, out_w_ref, out_idx_ref):
    # x_ref      : (N_MODELS, TB)      batch on the lane axis
    # w1_ref     : (HIDDEN, N_MODELS)  columns are (HIDDEN, 1) vectors
    # b1_ref     : (HIDDEN, 1)
    # w2_ref     : (HIDDEN, N_MODELS)  columns are (HIDDEN, 1) vectors
    # b2_ref     : (N_MODELS, 1)
    # out_w_ref  : (N_MODELS, TB)
    # out_idx_ref: (TOP_K, TB)
    w1 = w1_ref[...]
    b1 = b1_ref[...]
    w2 = w2_ref[...]
    b2 = b2_ref[...]

    n_chunks = x_ref.shape[1] // CHUNK

    def chunk_body(c, carry):
        off = pl.multiple_of(c * CHUNK, CHUNK)
        x = x_ref[:, pl.ds(off, CHUNK)]                          # (N_MODELS, CHUNK)

        # ---- Linear(n_models -> hidden): K=4 unrolled outer-product FMAs ----
        # (stride-0 broadcast loads were considered; plain broadcast keeps lowering simple)
        h = b1 + w1[:, 0:1] * x[0:1, :]
        for k in range(1, N_MODELS):
            h = h + w1[:, k:k + 1] * x[k:k + 1, :]
        h = jnp.maximum(h, 0.0)                                  # (HIDDEN, CHUNK)

        # ---- Linear(hidden -> n_models): 4 full-density mults + sublane reduces ----
        logits = jnp.concatenate(
            [jnp.sum(w2[:, m:m + 1] * h, axis=0, keepdims=True)
             for m in range(N_MODELS)],
            axis=0) + b2                                         # (N_MODELS, CHUNK)

        # ---- packed softmax numerators (one exp pass, sublane max/sum on XLU) ----
        mx = jnp.max(logits, axis=0, keepdims=True)              # (1, CHUNK)
        e = jnp.exp(logits - mx)                                 # (N_MODELS, CHUNK)
        s = jnp.sum(e, axis=0, keepdims=True)                    # (1, CHUNK)

        # ---- running top-2 over the 4 expert rows (first-occurrence tie-break) ----
        m1 = e[0:1, :]
        i1 = jnp.zeros((1, CHUNK), jnp.int32)
        m2 = jnp.full((1, CHUNK), -jnp.inf, jnp.float32)
        i2 = jnp.zeros((1, CHUNK), jnp.int32)
        for k in range(1, N_MODELS):
            v = e[k:k + 1, :]
            gt1 = v > m1
            gt2 = v > m2
            n_m2 = jnp.maximum(m2, jnp.minimum(m1, v))
            i2 = jnp.where(gt1, i1, jnp.where(gt2, jnp.int32(k), i2))
            i1 = jnp.where(gt1, jnp.int32(k), i1)
            m2 = n_m2
            m1 = jnp.maximum(m1, v)

        # ---- fused mask + renormalisation (exact rewrite of the reference) ----
        #   reference: w = e/s; masked = w*mask; out = masked / (sum(masked)+1e-8)
        #            == (e*mask) / (m1 + m2 + 1e-8*s)
        denom = m1 + m2 + jnp.float32(1e-8) * s
        r = pl.reciprocal(denom, approx=True)                    # EUP slot (idle here)
        inv = r * (2.0 - denom * r)                              # 1 Newton step -> ~f32 exact

        # ---- packed mask + single full-tile stores ----
        row_ids = lax.broadcasted_iota(jnp.int32, (N_MODELS, CHUNK), 0)
        keep = jnp.logical_or(row_ids == i1, row_ids == i2)
        out_w_ref[:, pl.ds(off, CHUNK)] = jnp.where(keep, e, 0.0) * inv
        out_idx_ref[:, pl.ds(off, CHUNK)] = jnp.concatenate([i1, i2], axis=0)
        return carry

    lax.fori_loop(0, n_chunks, chunk_body, 0)


def gating_network(x, w1, b1, w2, b2, *, tile_b_max=TILE_B_MAX):
    """x: (B, N_MODELS); w1: (N_MODELS, HIDDEN); b1: (1, HIDDEN);
       w2: (HIDDEN, N_MODELS); b2: (1, N_MODELS).
    Returns (normalized_weights (B, N_MODELS) f32, top_indices (B, TOP_K) i32)."""
    B = x.shape[0]
    # Clamp the tile to the batch (rounded up to a chunk) so tiny batches stay cheap;
    # large batches get big tiles and >=2 grid steps, so v7x uses both TensorCores.
    tile_b = min(tile_b_max, ((B + CHUNK - 1) // CHUNK) * CHUNK)
    n_tiles = pl.cdiv(B, tile_b)
    Bp = n_tiles * tile_b

    # Lane-dense layout plumbing (done by XLA outside the kernel).
    x_t = jnp.pad(x.astype(jnp.float32).T, ((0, 0), (0, Bp - B)))  # (N_MODELS, Bp)
    w1_t = w1.T                                 # (HIDDEN, N_MODELS)
    b1_t = b1.reshape(HIDDEN_DIM, 1)
    w2_t = w2                                   # already (HIDDEN, N_MODELS)
    b2_t = b2.reshape(N_MODELS, 1)

    out_w_t, out_idx_t = pl.pallas_call(
        gating_kernel,
        out_shape=(
            jax.ShapeDtypeStruct((N_MODELS, Bp), jnp.float32),
            jax.ShapeDtypeStruct((TOP_K, Bp), jnp.int32),
        ),
        grid=(n_tiles,),
        in_specs=[
            pl.BlockSpec((N_MODELS, tile_b), lambda i: (0, i)),        # x tile
            pl.BlockSpec((HIDDEN_DIM, N_MODELS), lambda i: (0, 0)),    # w1 (pinned)
            pl.BlockSpec((HIDDEN_DIM, 1), lambda i: (0, 0)),           # b1 (pinned)
            pl.BlockSpec((HIDDEN_DIM, N_MODELS), lambda i: (0, 0)),    # w2 (pinned)
            pl.BlockSpec((N_MODELS, 1), lambda i: (0, 0)),             # b2 (pinned)
        ],
        out_specs=(
            pl.BlockSpec((N_MODELS, tile_b), lambda i: (0, i)),
            pl.BlockSpec((TOP_K, tile_b), lambda i: (0, i)),
        ),
        compiler_params=pltpu.CompilerParams(
            dimension_semantics=("parallel",)),
    )(x_t, w1_t, b1_t, w2_t, b2_t)

    # Slice off batch padding and restore the (B, ...) contract.
    return out_w_t[:, :B].T, out_idx_t[:, :B].T


def init_params(key):
    """Deterministic init mimicking nn.Linear's uniform(-1/sqrt(fan_in), +)."""
    k1, k2, k3, k4 = jax.random.split(key, 4)
    bnd1 = 1.0 / jnp.sqrt(N_MODELS)
    bnd2 = 1.0 / jnp.sqrt(HIDDEN_DIM)
    w1 = jax.random.uniform(k1, (N_MODELS, HIDDEN_DIM), jnp.float32, -bnd1, bnd1)
    b1 = jax.random.uniform(k2, (1, HIDDEN_DIM), jnp.float32, -bnd1, bnd1)
    w2 = jax.random.uniform(k3, (HIDDEN_DIM, N_MODELS), jnp.float32, -bnd2, bnd2)
    b2 = jax.random.uniform(k4, (1, N_MODELS), jnp.float32, -bnd2, bnd2)
    return w1, b1, w2, b2


def reference(x, w1, b1, w2, b2):
    """Pure-JAX reference matching the PyTorch forward."""
    h = jnp.maximum(x @ w1 + b1, 0.0)
    w = jax.nn.softmax(h @ w2 + b2, axis=-1)
    _, top_idx = lax.top_k(w, TOP_K)
    mask = jnp.zeros_like(w)
    mask = jax.vmap(lambda mm, i: mm.at[i].set(1.0))(mask, top_idx)
    masked = w * mask
    norm = masked / (masked.sum(-1, keepdims=True) + 1e-8)
    return norm, top_idx


if __name__ == "__main__":
    key = jax.random.PRNGKey(0)
    kp, kx1, kx2, kx3 = jax.random.split(key, 4)
    w1, b1, w2, b2 = init_params(kp)

    cases = [
        (kx1, 8, {}),                          # tiny batch, single chunk
        (kx2, 1600, {}),                       # multi-chunk inner loop + padding
        (kx3, 1600, dict(tile_b_max=512)),     # multi-tile grid (pinned-weight path)
    ]
    for kxi, B, kwargs in cases:
        raw = jax.random.uniform(kxi, (B, N_MODELS), jnp.float32, 0.05, 1.0)
        x = raw / raw.sum(-1, keepdims=True)   # "expert_probs" rows

        norm_w, top_idx = gating_network(x, w1, b1, w2, b2, **kwargs)
        jax.block_until_ready((norm_w, top_idx))

        ref_w, ref_idx = reference(x, w1, b1, w2, b2)
        assert norm_w.shape == (B, N_MODELS) and top_idx.shape == (B, TOP_K)
        assert jnp.allclose(norm_w, ref_w, atol=1e-5), f"weights mismatch (B={B}, {kwargs})"
        assert jnp.array_equal(jnp.sort(top_idx, -1), jnp.sort(ref_idx, -1)), \
            f"indices mismatch (B={B}, {kwargs})"

    print("KERNEL_OK")
</pallas_src>

<mosaic_0001>
module attributes {stable_mosaic.version = 11 : i64} {
  func.func @gating_kernel(%arg0: i32, %arg1: memref<4x512xf32, #tpu.memory_space<vmem>>, %arg2: memref<16x4xf32, #tpu.memory_space<vmem>>, %arg3: memref<16x1xf32, #tpu.memory_space<vmem>>, %arg4: memref<16x4xf32, #tpu.memory_space<vmem>>, %arg5: memref<4x1xf32, #tpu.memory_space<vmem>>, %arg6: memref<4x512xf32, #tpu.memory_space<vmem>>, %arg7: memref<2x512xi32, #tpu.memory_space<vmem>>) attributes {dimension_semantics = [#tpu.dimension_semantics<parallel>], iteration_bounds = array<i64: 1>, scalar_prefetch = 0 : i64, scratch_operands = 0 : i64, tpu.core_type = #tpu.core_type<tc>, window_params = [{transform_indices = @transform_0, window_bounds = array<i64: 4, 512>}, {pipeline_mode = #tpu.pipeline_mode<synchronous>, transform_indices = @transform_1, window_bounds = array<i64: 16, 4>}, {pipeline_mode = #tpu.pipeline_mode<synchronous>, transform_indices = @transform_2, window_bounds = array<i64: 16, 1>}, {pipeline_mode = #tpu.pipeline_mode<synchronous>, transform_indices = @transform_3, window_bounds = array<i64: 16, 4>}, {pipeline_mode = #tpu.pipeline_mode<synchronous>, transform_indices = @transform_4, window_bounds = array<i64: 4, 1>}, {transform_indices = @transform_5, window_bounds = array<i64: 4, 512>}, {transform_indices = @transform_6, window_bounds = array<i64: 2, 512>}]} {
    %c0 = arith.constant 0 : index
    %c0_0 = arith.constant 0 : index
    %0 = vector.load %arg2[%c0, %c0_0] : memref<16x4xf32, #tpu.memory_space<vmem>>, vector<16x4xf32>
    %c0_1 = arith.constant 0 : index
    %c0_2 = arith.constant 0 : index
    %1 = vector.load %arg3[%c0_1, %c0_2] : memref<16x1xf32, #tpu.memory_space<vmem>>, vector<16x1xf32>
    %c0_3 = arith.constant 0 : index
    %c0_4 = arith.constant 0 : index
    %2 = vector.load %arg4[%c0_3, %c0_4] : memref<16x4xf32, #tpu.memory_space<vmem>>, vector<16x4xf32>
    %c0_5 = arith.constant 0 : index
    %c0_6 = arith.constant 0 : index
    %3 = vector.load %arg5[%c0_5, %c0_6] : memref<4x1xf32, #tpu.memory_space<vmem>>, vector<4x1xf32>
    %c0_i32 = arith.constant 0 : i32
    %c512_i32 = arith.constant 512 : i32
    %4 = arith.muli %c0_i32, %c512_i32 : i32
    %5 = tpu.assume_multiple %4, 512 : i32
    %c0_7 = arith.constant 0 : index
    %6 = arith.index_cast %5 : i32 to index
    %7 = vector.load %arg1[%c0_7, %6] : memref<4x512xf32, #tpu.memory_space<vmem>>, vector<4x512xf32>
    %8 = vector.extract_strided_slice %0 {offsets = [0, 0], sizes = [16, 1], strides = [1, 1]} : vector<16x4xf32> to vector<16x1xf32>
    %9 = vector.extract_strided_slice %7 {offsets = [0, 0], sizes = [1, 512], strides = [1, 1]} : vector<4x512xf32> to vector<1x512xf32>
    %10 = vector.broadcast %8 : vector<16x1xf32> to vector<16x512xf32>
    %11 = vector.broadcast %9 : vector<1x512xf32> to vector<16x512xf32>
    %12 = arith.mulf %10, %11 : vector<16x512xf32>
    %13 = vector.broadcast %1 : vector<16x1xf32> to vector<16x512xf32>
    %14 = arith.addf %13, %12 : vector<16x512xf32>
    %15 = vector.extract_strided_slice %0 {offsets = [0, 1], sizes = [16, 1], strides = [1, 1]} : vector<16x4xf32> to vector<16x1xf32>
    %16 = vector.extract_strided_slice %7 {offsets = [1, 0], sizes = [1, 512], strides = [1, 1]} : vector<4x512xf32> to vector<1x512xf32>
    %17 = vector.broadcast %15 : vector<16x1xf32> to vector<16x512xf32>
    %18 = vector.broadcast %16 : vector<1x512xf32> to vector<16x512xf32>
    %19 = arith.mulf %17, %18 : vector<16x512xf32>
    %20 = arith.addf %14, %19 : vector<16x512xf32>
    %21 = vector.extract_strided_slice %0 {offsets = [0, 2], sizes = [16, 1], strides = [1, 1]} : vector<16x4xf32> to vector<16x1xf32>
    %22 = vector.extract_strided_slice %7 {offsets = [2, 0], sizes = [1, 512], strides = [1, 1]} : vector<4x512xf32> to vector<1x512xf32>
    %23 = vector.broadcast %21 : vector<16x1xf32> to vector<16x512xf32>
    %24 = vector.broadcast %22 : vector<1x512xf32> to vector<16x512xf32>
    %25 = arith.mulf %23, %24 : vector<16x512xf32>
    %26 = arith.addf %20, %25 : vector<16x512xf32>
    %27 = vector.extract_strided_slice %0 {offsets = [0, 3], sizes = [16, 1], strides = [1, 1]} : vector<16x4xf32> to vector<16x1xf32>
    %28 = vector.extract_strided_slice %7 {offsets = [3, 0], sizes = [1, 512], strides = [1, 1]} : vector<4x512xf32> to vector<1x512xf32>
    %29 = vector.broadcast %27 : vector<16x1xf32> to vector<16x512xf32>
    %30 = vector.broadcast %28 : vector<1x512xf32> to vector<16x512xf32>
    %31 = arith.mulf %29, %30 : vector<16x512xf32>
    %32 = arith.addf %26, %31 : vector<16x512xf32>
    %cst = arith.constant 0.000000e+00 : f32
    %33 = vector.broadcast %cst : f32 to vector<16x512xf32>
    %34 = arith.maximumf %32, %33 : vector<16x512xf32>
    %35 = vector.extract_strided_slice %2 {offsets = [0, 0], sizes = [16, 1], strides = [1, 1]} : vector<16x4xf32> to vector<16x1xf32>
    %36 = vector.broadcast %35 : vector<16x1xf32> to vector<16x512xf32>
    %37 = arith.mulf %36, %34 : vector<16x512xf32>
    %cst_8 = arith.constant dense<0.000000e+00> : vector<512xf32>
    %38 = vector.multi_reduction <add>, %37, %cst_8 [0] : vector<16x512xf32> to vector<512xf32>
    %39 = vector.shape_cast %38 : vector<512xf32> to vector<1x512xf32>
    %40 = vector.extract_strided_slice %2 {offsets = [0, 1], sizes = [16, 1], strides = [1, 1]} : vector<16x4xf32> to vector<16x1xf32>
    %41 = vector.broadcast %40 : vector<16x1xf32> to vector<16x512xf32>
    %42 = arith.mulf %41, %34 : vector<16x512xf32>
    %cst_9 = arith.constant dense<0.000000e+00> : vector<512xf32>
    %43 = vector.multi_reduction <add>, %42, %cst_9 [0] : vector<16x512xf32> to vector<512xf32>
    %44 = vector.shape_cast %43 : vector<512xf32> to vector<1x512xf32>
    %45 = vector.extract_strided_slice %2 {offsets = [0, 2], sizes = [16, 1], strides = [1, 1]} : vector<16x4xf32> to vector<16x1xf32>
    %46 = vector.broadcast %45 : vector<16x1xf32> to vector<16x512xf32>
    %47 = arith.mulf %46, %34 : vector<16x512xf32>
    %cst_10 = arith.constant dense<0.000000e+00> : vector<512xf32>
    %48 = vector.multi_reduction <add>, %47, %cst_10 [0] : vector<16x512xf32> to vector<512xf32>
    %49 = vector.shape_cast %48 : vector<512xf32> to vector<1x512xf32>
    %50 = vector.extract_strided_slice %2 {offsets = [0, 3], sizes = [16, 1], strides = [1, 1]} : vector<16x4xf32> to vector<16x1xf32>
    %51 = vector.broadcast %50 : vector<16x1xf32> to vector<16x512xf32>
    %52 = arith.mulf %51, %34 : vector<16x512xf32>
    %cst_11 = arith.constant dense<0.000000e+00> : vector<512xf32>
    %53 = vector.multi_reduction <add>, %52, %cst_11 [0] : vector<16x512xf32> to vector<512xf32>
    %54 = vector.shape_cast %53 : vector<512xf32> to vector<1x512xf32>
    %55 = tpu.concatenate %39, %44, %49, %54 in 0 : vector<1x512xf32>, vector<1x512xf32>, vector<1x512xf32>, vector<1x512xf32> -> vector<4x512xf32>
    %56 = vector.broadcast %3 : vector<4x1xf32> to vector<4x512xf32>
    %57 = arith.addf %55, %56 : vector<4x512xf32>
    %cst_12 = arith.constant dense<0xFF800000> : vector<512xf32>
    %58 = vector.multi_reduction <maximumf>, %57, %cst_12 [0] : vector<4x512xf32> to vector<512xf32>
    %59 = vector.shape_cast %58 : vector<512xf32> to vector<1x512xf32>
    %60 = vector.broadcast %59 : vector<1x512xf32> to vector<4x512xf32>
    %61 = arith.subf %57, %60 : vector<4x512xf32>
    %62 = math.exp %61 : vector<4x512xf32>
    %cst_13 = arith.constant dense<0.000000e+00> : vector<512xf32>
    %63 = vector.multi_reduction <add>, %62, %cst_13 [0] : vector<4x512xf32> to vector<512xf32>
    %64 = vector.shape_cast %63 : vector<512xf32> to vector<1x512xf32>
    %65 = vector.extract_strided_slice %62 {offsets = [0, 0], sizes = [1, 512], strides = [1, 1]} : vector<4x512xf32> to vector<1x512xf32>
    %c0_i32_14 = arith.constant 0 : i32
    %66 = vector.broadcast %c0_i32_14 : i32 to vector<1x512xi32>
    %cst_15 = arith.constant 0xFF800000 : f32
    %67 = vector.broadcast %cst_15 : f32 to vector<1x512xf32>
    %c0_i32_16 = arith.constant 0 : i32
    %68 = vector.broadcast %c0_i32_16 : i32 to vector<1x512xi32>
    %69 = vector.extract_strided_slice %62 {offsets = [1, 0], sizes = [1, 512], strides = [1, 1]} : vector<4x512xf32> to vector<1x512xf32>
    %70 = arith.cmpf ogt, %69, %65 : vector<1x512xf32>
    %71 = arith.cmpf ogt, %69, %67 : vector<1x512xf32>
    %72 = arith.minimumf %65, %69 : vector<1x512xf32>
    %73 = arith.maximumf %67, %72 : vector<1x512xf32>
    %c1_i32 = arith.constant 1 : i32
    %74 = vector.broadcast %c1_i32 : i32 to vector<1x512xi32>
    %75 = arith.select %71, %74, %68 : vector<1x512xi1>, vector<1x512xi32>
    %76 = arith.select %70, %66, %75 : vector<1x512xi1>, vector<1x512xi32>
    %c1_i32_17 = arith.constant 1 : i32
    %77 = vector.broadcast %c1_i32_17 : i32 to vector<1x512xi32>
    %78 = arith.select %70, %77, %66 : vector<1x512xi1>, vector<1x512xi32>
    %79 = arith.maximumf %65, %69 : vector<1x512xf32>
    %80 = vector.extract_strided_slice %62 {offsets = [2, 0], sizes = [1, 512], strides = [1, 1]} : vector<4x512xf32> to vector<1x512xf32>
    %81 = arith.cmpf ogt, %80, %79 : vector<1x512xf32>
    %82 = arith.cmpf ogt, %80, %73 : vector<1x512xf32>
    %83 = arith.minimumf %79, %80 : vector<1x512xf32>
    %84 = arith.maximumf %73, %83 : vector<1x512xf32>
    %c2_i32 = arith.constant 2 : i32
    %85 = vector.broadcast %c2_i32 : i32 to vector<1x512xi32>
    %86 = arith.select %82, %85, %76 : vector<1x512xi1>, vector<1x512xi32>
    %87 = arith.select %81, %78, %86 : vector<1x512xi1>, vector<1x512xi32>
    %c2_i32_18 = arith.constant 2 : i32
    %88 = vector.broadcast %c2_i32_18 : i32 to vector<1x512xi32>
    %89 = arith.select %81, %88, %78 : vector<1x512xi1>, vector<1x512xi32>
    %90 = arith.maximumf %79, %80 : vector<1x512xf32>
    %91 = vector.extract_strided_slice %62 {offsets = [3, 0], sizes = [1, 512], strides = [1, 1]} : vector<4x512xf32> to vector<1x512xf32>
    %92 = arith.cmpf ogt, %91, %90 : vector<1x512xf32>
    %93 = arith.cmpf ogt, %91, %84 : vector<1x512xf32>
    %94 = arith.minimumf %90, %91 : vector<1x512xf32>
    %95 = arith.maximumf %84, %94 : vector<1x512xf32>
    %c3_i32 = arith.constant 3 : i32
    %96 = vector.broadcast %c3_i32 : i32 to vector<1x512xi32>
    %97 = arith.select %93, %96, %87 : vector<1x512xi1>, vector<1x512xi32>
    %98 = arith.select %92, %89, %97 : vector<1x512xi1>, vector<1x512xi32>
    %c3_i32_19 = arith.constant 3 : i32
    %99 = vector.broadcast %c3_i32_19 : i32 to vector<1x512xi32>
    %100 = arith.select %92, %99, %89 : vector<1x512xi1>, vector<1x512xi32>
    %101 = arith.maximumf %90, %91 : vector<1x512xf32>
    %102 = arith.addf %101, %95 : vector<1x512xf32>
    %cst_20 = arith.constant 9.99999993E-9 : f32
    %103 = vector.broadcast %cst_20 : f32 to vector<1x512xf32>
    %104 = arith.mulf %103, %64 : vector<1x512xf32>
    %105 = arith.addf %102, %104 : vector<1x512xf32>
    %106 = tpu.reciprocal %105 {approx = true} : vector<1x512xf32> -> vector<1x512xf32>
    %107 = arith.mulf %105, %106 : vector<1x512xf32>
    %cst_21 = arith.constant 2.000000e+00 : f32
    %108 = vector.broadcast %cst_21 : f32 to vector<1x512xf32>
    %109 = arith.subf %108, %107 : vector<1x512xf32>
    %110 = arith.mulf %106, %109 : vector<1x512xf32>
    %111 = tpu.iota {dimensions = array<i32: 0>} : vector<4x512xi32>
    %112 = vector.broadcast %100 : vector<1x512xi32> to vector<4x512xi32>
    %113 = arith.cmpi eq, %111, %112 : vector<4x512xi32>
    %114 = vector.broadcast %98 : vector<1x512xi32> to vector<4x512xi32>
    %115 = arith.cmpi eq, %111, %114 : vector<4x512xi32>
    %116 = arith.ori %113, %115 : vector<4x512xi1>
    %cst_22 = arith.constant 0.000000e+00 : f32
    %117 = vector.broadcast %cst_22 : f32 to vector<4x512xf32>
    %118 = arith.select %116, %62, %117 : vector<4x512xi1>, vector<4x512xf32>
    %119 = vector.broadcast %110 : vector<1x512xf32> to vector<4x512xf32>
    %120 = arith.mulf %118, %119 : vector<4x512xf32>
    %c0_23 = arith.constant 0 : index
    %121 = arith.index_cast %5 : i32 to index
    %122 = vector.load %arg6[%c0_23, %121] : memref<4x512xf32, #tpu.memory_space<vmem>>, vector<4x512xf32>
    tpu.vector_store %arg6[%c0_23, %121], %120 {strides = array<i32>} : memref<4x512xf32, #tpu.memory_space<vmem>>, vector<4x512xf32>,
    %123 = tpu.concatenate %100, %98 in 0 : vector<1x512xi32>, vector<1x512xi32> -> vector<2x512xi32>
    %c0_24 = arith.constant 0 : index
    %124 = arith.index_cast %5 : i32 to index
    %125 = vector.load %arg7[%c0_24, %124] : memref<2x512xi32, #tpu.memory_space<vmem>>, vector<2x512xi32>
    tpu.vector_store %arg7[%c0_24, %124], %123 {strides = array<i32>} : memref<2x512xi32, #tpu.memory_space<vmem>>, vector<2x512xi32>,
    %c1_i32_25 = arith.constant 1 : i32
    return
  }
  func.func @transform_0(%arg0: i32) -> (i32, i32) {
    %c0_i32 = arith.constant 0 : i32
    %c0_i32_0 = arith.constant 0 : i32
    return %c0_i32, %arg0 : i32, i32
  }
  func.func @transform_1(%arg0: i32) -> (i32, i32) {
    %c0_i32 = arith.constant 0 : i32
    %c0_i32_0 = arith.constant 0 : i32
    %c0_i32_1 = arith.constant 0 : i32
    return %c0_i32, %c0_i32_0 : i32, i32
  }
  func.func @transform_2(%arg0: i32) -> (i32, i32) {
    %c0_i32 = arith.constant 0 : i32
    %c0_i32_0 = arith.constant 0 : i32
    %c0_i32_1 = arith.constant 0 : i32
    return %c0_i32, %c0_i32_0 : i32, i32
  }
  func.func @transform_3(%arg0: i32) -> (i32, i32) {
    %c0_i32 = arith.constant 0 : i32
    %c0_i32_0 = arith.constant 0 : i32
    %c0_i32_1 = arith.constant 0 : i32
    return %c0_i32, %c0_i32_0 : i32, i32
  }
  func.func @transform_4(%arg0: i32) -> (i32, i32) {
    %c0_i32 = arith.constant 0 : i32
    %c0_i32_0 = arith.constant 0 : i32
    %c0_i32_1 = arith.constant 0 : i32
    return %c0_i32, %c0_i32_0 : i32, i32
  }
  func.func @transform_5(%arg0: i32) -> (i32, i32) {
    %c0_i32 = arith.constant 0 : i32
    %c0_i32_0 = arith.constant 0 : i32
    return %c0_i32, %arg0 : i32, i32
  }
  func.func @transform_6(%arg0: i32) -> (i32, i32) {
    %c0_i32 = arith.constant 0 : i32
    %c0_i32_0 = arith.constant 0 : i32
    return %c0_i32, %arg0 : i32, i32
  }
}

</mosaic_0001>

<bundles_post_ra>
// kernel: tpu_custom_call.1
= control target key start
LH: loop header
LB: loop body
LE: loop exit
PB: predicated region body
PF: predicated region fallthrough
CT: control target
= control target key end

     0   :  { %12 = vsyncpa [#allocation3], 0  ;;  %v878_v2 = vmov 2   ;;  %v879_v3 = vmov 0   ;;  %s1393_s0 = inlined_call_operand.vmem [shape: f32[4,512], index: 0, kind: input, shape index: {}]   ;;  %s1394_s1 = inlined_call_operand.vmem [shape: f32[16,4], index: 1, kind: input, shape index: {}]   ;;  %s1395_s2 = inlined_call_operand.vmem [shape: f32[16,1], index: 2, kind: input, shape index: {}]   ;;  %s1396_s3 = inlined_call_operand.vmem [shape: f32[16,4], index: 3, kind: input, shape index: {}]   ;;  %s1397_s4 = inlined_call_operand.vmem [shape: f32[4,1], index: 4, kind: input, shape index: {}]   ;;  %s1398_s5 = inlined_call_operand.hbm [shape: f32[4,512], index: 5, kind: output, shape index: {0}]   ;;  %s1399_s6 = inlined_call_operand.hbm [shape: s32[2,512], index: 6, kind: output, shape index: {1}]  }
   0x1   :  { %v26_v0 = vld [vmem:[%s1395_s2] sm:$0xff]  ;;  %796 = vset.pattern.permute.xlu0 %v878_v2  ;;  %794 = vset.pattern.permute.xlu1 %v879_v3 }
   0x2   :  { %v24_v1 = vld [vmem:[%s1394_s1] sm:$0xff] }
   0x3   :  { %13 = vsyncpa [#allocation5], 0  ;;  %67 = vperm.xlu1 %794, %v26_v0   ;;  %120 = vperm.xlu0 %796, %v24_v1   ;;  %v880_v4 = vmov 1   ;;  %v27_v5 = vld [vmem:[%s1395_s2 + $0x8] sm:$0xff]  ;;  %v881_v7 = vmov 3   ;;  %v28_v9 = vld [vmem:[%s1396_s3] sm:$0xff] }
   0x4   :  { %795 = vset.pattern.permute.xlu2 %v880_v4  ;;  %v25_v6 = vld [vmem:[%s1394_s1 + $0x8] sm:$0xff]  ;;  %v30_v10 = vld [vmem:[%s1397_s4] sm:$0xf]  ;;  %vm377_vm0 = vcmask 1040384   ;;  %vm382_vm1 = vcmask 1041408   ;;  %vm387_vm2 = vcmask 1042432  }
   0x5   :  { %84 = vperm.xlu2 %795, %v24_v1   ;;  %v29_v8 = vld [vmem:[%s1396_s3 + $0x8] sm:$0xff]  ;;  %v31_v13 = vld [vmem:[%s1393_s0] sm:$0xff]  ;;  %vm401_vm3 = vcmask 1043456   ;;  %s774_s14 = sshll.u32 %s1399_s6, 4  ;;  %s883_s6 = smov [#allocation2]   ;;  %s775_s14 = int_to_ptr.hbm [resolvable:$true] %s774_s14 }
   0x6   :  { %v32_v14 = vld [vmem:[%s1393_s0 + $0x8] sm:$0xff]  ;;  %v45_v18 = vperm.slane %v31_v13, 0  ;;  %v46_v19 = vperm.slane %v31_v13, 4  ;;  %v91_v22 = vperm.slane %v31_v13, 1  ;;  %v92_v23 = vperm.slane %v31_v13, 5  ;;  %s882_s0 = smov [#allocation4]  }
   0x7   :  { %v47_v20 = vperm.slane %v32_v14, 0  ;;  %v48_v21 = vperm.slane %v32_v14, 4  ;;  %v93_v24 = vperm.slane %v32_v14, 1  ;;  %v94_v25 = vperm.slane %v32_v14, 5  ;;  %s1334_s4 = sshll.u32 %s882_s0, 4  ;;  %s761_s15 = sshll.u32 %s883_s6, 4  ;;  %s773_s4 = int_to_ptr.vmem [resolvable:$true] %s1334_s4  ;;  %s762_s15 = int_to_ptr.vmem [resolvable:$true] %s761_s15 }
   0x8   :  { %v127_v26 = vperm.slane %v31_v13, 2  ;;  %v128_v27 = vperm.slane %v31_v13, 6  ;;  %v129_v28 = vperm.slane %v32_v14, 2  ;;  %v130_v29 = vperm.slane %v32_v14, 6  ;;  %s763_s18 = sshll.u32 %s1398_s5, 4  ;;  %s764_s18 = int_to_ptr.hbm [resolvable:$true] %s763_s18 }
   0x9   :  { %v163_v30 = vperm.slane %v31_v13, 3  ;;  %v164_v31 = vperm.slane %v31_v13, 7  ;;  %v165_v32 = vperm.slane %v32_v14, 3  ;;  %v166_v33 = vperm.slane %v32_v14, 7 }
   0xa   :  { %v53_v34 = vperm.slane %v45_v18, 0  ;;  %v54_v35 = vperm.slane %v46_v19, 0  ;;  %v55_v36 = vperm.slane %v47_v20, 0  ;;  %v56_v37 = vperm.slane %v48_v21, 0 }
   0xb   :  { %72 = vperm.xlu1 %794, %v27_v5   ;;  %797 = vset.pattern.permute.xlu0 %v879_v3  ;;  %v99_v38 = vperm.slane %v91_v22, 1  ;;  %v100_v39 = vperm.slane %v92_v23, 1  ;;  %v101_v40 = vperm.slane %v93_v24, 1  ;;  %v102_v41 = vperm.slane %v94_v25, 1 }
   0xc   :  { %35 = vperm.xlu0 %797, %v24_v1   ;;  %v135_v42 = vperm.slane %v127_v26, 2  ;;  %v136_v43 = vperm.slane %v128_v27, 2  ;;  %v137_v44 = vperm.slane %v129_v28, 2  ;;  %v138_v45 = vperm.slane %v130_v29, 2 }
   0xd   :  { %88 = vperm.xlu2 %795, %v25_v6   ;;  %v953_v47 = vperm.slane %v163_v30, 3  ;;  %v955_v48 = vperm.slane %v164_v31, 3  ;;  %v957_v49 = vperm.slane %v165_v32, 3  ;;  %v959_v50 = vperm.slane %v166_v33, 3 }
  0x13   :  { %798 = vset.pattern.permute.xlu1 %v878_v2 }
  0x14   :  { %124 = vperm.xlu1 %798, %v25_v6   ;;  %40 = vperm.xlu0 %797, %v25_v6  }
  0x15   :  { %799 = vset.pattern.permute.xlu2 %v881_v7 }
  0x16   :  { %156 = vperm.xlu2 %799, %v24_v1  }
  0x1c   :  { %800 = vset.pattern.permute.xlu1 %v881_v7  ;;  %206 = vperm.xlu0 %797, %v29_v8  }
  0x1d   :  { %160 = vperm.xlu1 %800, %v25_v6  }
  0x1e   :  { %801 = vset.pattern.permute.xlu2 %v879_v3 }
  0x1f   :  { %201 = vperm.xlu2 %801, %v28_v9  }
  0x24   :  { %806 = vset.pattern.permute.xlu0 %v881_v7 }
  0x25   :  { %802 = vset.pattern.permute.xlu1 %v880_v4  ;;  %334 = vperm.xlu0 %806, %v28_v9  }
  0x26   :  { %246 = vperm.xlu1 %802, %v28_v9  }
  0x27   :  { %803 = vset.pattern.permute.xlu2 %v880_v4 }
  0x28   :  { %250 = vperm.xlu2 %803, %v29_v8  }
  0x2d   :  { %809 = vset.pattern.permute.xlu0 %v879_v3 }
  0x2e   :  { %804 = vset.pattern.permute.xlu1 %v878_v2 }
  0x2f   :  { %290 = vperm.xlu1 %804, %v28_v9  }
  0x30   :  { %805 = vset.pattern.permute.xlu2 %v878_v2 }
  0x31   :  { %294 = vperm.xlu2 %805, %v29_v8  }
  0x37   :  { %807 = vset.pattern.permute.xlu1 %v881_v7 }
  0x38   :  { %338 = vperm.xlu1 %807, %v29_v8  }
  0x39   :  { %808 = vset.pattern.permute.xlu2 %v879_v3 }
  0x3a   :  { %394 = vperm.xlu2 %808, %v30_v10  }
  0x5f   :  { %v85_v11 = vpop.permute.xlu2 %84 }
  0x60   :  { %v103_v56 = vmul.f32 %v99_v38, %v85_v11  ;;  %v104_v57 = vmul.f32 %v100_v39, %v85_v11  ;;  %v105_v58 = vmul.f32 %v101_v40, %v85_v11  ;;  %v106_v59 = vmul.f32 %v102_v41, %v85_v11 }
  0x67   :  { %v945_v12 = vpop.permute.xlu2 %88 }
  0x68   :  { %v108_v23 = vmul.f32 %v100_v39, %v945_v12  ;;  %v109_v24 = vmul.f32 %v101_v40, %v945_v12  ;;  %v110_v25 = vmul.f32 %v102_v41, %v945_v12 }
  0x70   :  { %v157_v17 = vpop.permute.xlu2 %156 }
  0x71   :  { %v175_v10 = vmul.f32 %v953_v47, %v157_v17  ;;  %v176_v13 = vmul.f32 %v955_v48, %v157_v17  ;;  %v177_v11 = vmul.f32 %v957_v49, %v157_v17  ;;  %v178_v14 = vmul.f32 %v959_v50, %v157_v17 }
  0x75   :  { %v68_v15 = vpop.permute.xlu1 %67  ;;  %v121_v16 = vpop.permute.xlu0 %120 }
  0x76   :  { %v139_v1 = vmul.f32 %v135_v42, %v121_v16  ;;  %v140_v2 = vmul.f32 %v136_v43, %v121_v16  ;;  %v141_v4 = vmul.f32 %v137_v44, %v121_v16  ;;  %v142_v5 = vmul.f32 %v138_v45, %v121_v16 }
  0x77   :  { %v107_v16 = vmul.f32 %v99_v38, %v945_v12 }
  0x79   :  { %v961_v0 = vpop.permute.xlu2 %201 }
  0x7d   :  { %v73_v46 = vpop.permute.xlu1 %72 }
  0x7e   :  { %v36_v51 = vpop.permute.xlu0 %35 }
  0x7f   :  { %v57_v52 = vmul.f32 %v53_v34, %v36_v51  ;;  %v58_v53 = vmul.f32 %v54_v35, %v36_v51  ;;  %v59_v54 = vmul.f32 %v55_v36, %v36_v51  ;;  %v60_v55 = vmul.f32 %v56_v37, %v36_v51 }
  0x81   :  { %v75_v60 = vadd.f32 %v68_v15, %v57_v52  ;;  %v76_v61 = vadd.f32 %v68_v15, %v58_v53  ;;  %v77_v62 = vadd.f32 %v68_v15, %v59_v54  ;;  %v78_v63 = vadd.f32 %v68_v15, %v60_v55 }
  0x82   :  { %v971_v33 = vpop.permute.xlu2 %250 }
  0x83   :  { %v111_v6 = vadd.f32 %v103_v56, %v75_v60  ;;  %v112_v7 = vadd.f32 %v104_v57, %v76_v61  ;;  %v113_v8 = vadd.f32 %v105_v58, %v77_v62  ;;  %v114_v9 = vadd.f32 %v106_v59, %v78_v63 }
  0x85   :  { %v147_v19 = vadd.f32 %v139_v1, %v111_v6  ;;  %v148_v20 = vadd.f32 %v140_v2, %v112_v7  ;;  %v149_v21 = vadd.f32 %v141_v4, %v113_v8  ;;  %v150_v22 = vadd.f32 %v142_v5, %v114_v9 }
  0x86   :  { %v125_v18 = vpop.permute.xlu1 %124  ;;  %v41_v15 = vpop.permute.xlu0 %40 }
  0x87   :  { %v61_v26 = vmul.f32 %v53_v34, %v41_v15  ;;  %v62_v27 = vmul.f32 %v54_v35, %v41_v15  ;;  %v63_v28 = vmul.f32 %v55_v36, %v41_v15  ;;  %v64_v29 = vmul.f32 %v56_v37, %v41_v15 }
  0x88   :  { %v183_v30 = vadd.f32 %v175_v10, %v147_v19  ;;  %v184_v17 = vadd.f32 %v176_v13, %v148_v20  ;;  %v185_v31 = vadd.f32 %v177_v11, %v149_v21  ;;  %v186_v32 = vadd.f32 %v178_v14, %v150_v22 }
  0x89   :  { %v79_v51 = vadd.f32 %v73_v46, %v61_v26  ;;  %v80_v52 = vadd.f32 %v73_v46, %v62_v27  ;;  %v81_v53 = vadd.f32 %v73_v46, %v63_v28  ;;  %v82_v38 = vadd.f32 %v73_v46, %v64_v29 }
  0x8a   :  { %v143_v54 = vmul.f32 %v135_v42, %v125_v18  ;;  %v144_v39 = vmul.f32 %v136_v43, %v125_v18  ;;  %v145_v55 = vmul.f32 %v137_v44, %v125_v18  ;;  %v146_v40 = vmul.f32 %v138_v45, %v125_v18 }
  0x8b   :  { %v115_v56 = vadd.f32 %v107_v16, %v79_v51  ;;  %v116_v12 = vadd.f32 %v108_v23, %v80_v52  ;;  %v117_v34 = vadd.f32 %v109_v24, %v81_v53  ;;  %v118_v35 = vadd.f32 %v110_v25, %v82_v38 }
  0x8c   :  { %v977_v43 = vmax.f32 %v183_v30, 0.0  ;;  %v979_v44 = vmax.f32 %v184_v17, 0.0  ;;  %v981_v45 = vmax.f32 %v185_v31, 0.0  ;;  %v983_v62 = vmax.f32 %v186_v32, 0.0 }
  0x8d   :  { %v151_v41 = vadd.f32 %v143_v54, %v115_v56  ;;  %v152_v57 = vadd.f32 %v144_v39, %v116_v12  ;;  %v153_v58 = vadd.f32 %v145_v55, %v117_v34  ;;  %v154_v59 = vadd.f32 %v146_v40, %v118_v35 }
  0x8e   :  { %v207_v36 = vpop.permute.xlu0 %206  ;;  %v209_v6 = vmul.f32 %v961_v0, %v977_v43  ;;  %v210_v7 = vmul.f32 %v961_v0, %v979_v44  ;;  %v211_v8 = vmul.f32 %v961_v0, %v981_v45  ;;  %v212_v9 = vmul.f32 %v961_v0, %v983_v62 }
  0x8f   :  { %v161_v37 = vpop.permute.xlu1 %160 }
  0x90   :  { %v179_v60 = vmul.f32 %v953_v47, %v161_v37  ;;  %v180_v61 = vmul.f32 %v955_v48, %v161_v37  ;;  %v181_v46 = vmul.f32 %v957_v49, %v161_v37  ;;  %v182_v42 = vmul.f32 %v959_v50, %v161_v37  ;;  %v295_v50 = vpop.permute.xlu2 %294 }
  0x92   :  { %v187_v63 = vadd.f32 %v179_v60, %v151_v41  ;;  %v188_v1 = vadd.f32 %v180_v61, %v152_v57  ;;  %v189_v2 = vadd.f32 %v181_v46, %v153_v58  ;;  %v190_v4 = vadd.f32 %v182_v42, %v154_v59 }
  0x94   :  { %v985_v5 = vmax.f32 %v187_v63, 0.0  ;;  %v987_v47 = vmax.f32 %v188_v1, 0.0  ;;  %v989_v48 = vmax.f32 %v189_v2, 0.0  ;;  %v991_v49 = vmax.f32 %v190_v4, 0.0 }
  0x96   :  { %v213_v10 = vmul.f32 %v207_v36, %v985_v5  ;;  %v214_v13 = vmul.f32 %v207_v36, %v987_v47  ;;  %v215_v11 = vmul.f32 %v207_v36, %v989_v48  ;;  %v216_v14 = vmul.f32 %v207_v36, %v991_v49 }
  0x97   :  { %v335_v18 = vpop.permute.xlu0 %334  ;;  %v301_v15 = vmul.f32 %v295_v50, %v985_v5  ;;  %v302_v19 = vmul.f32 %v295_v50, %v987_v47  ;;  %v303_v20 = vmul.f32 %v295_v50, %v989_v48  ;;  %v304_v24 = vmul.f32 %v295_v50, %v991_v49 }
  0x98   :  { %v247_v21 = vpop.permute.xlu1 %246  ;;  %v217_v22 = vadd.f32 %v213_v10, %v209_v6  ;;  %v224_v16 = vadd.f32 %v214_v13, %v210_v7  ;;  %v231_v23 = vadd.f32 %v215_v11, %v211_v8  ;;  %v238_v0 = vadd.f32 %v216_v14, %v212_v9 }
  0x99   :  { %v1010_v25 = vmul.f32 %v335_v18, %v977_v43  ;;  %v1013_v26 = vmul.f32 %v335_v18, %v979_v44  ;;  %v1016_v27 = vmul.f32 %v335_v18, %v981_v45  ;;  %v253_v31 = vmul.f32 %v247_v21, %v977_v43 }
  0x9a   :  { %v218_v28 = vrot.slane %v217_v22, 4  ;;  %v225_v29 = vrot.slane %v224_v16, 4  ;;  %v232_v30 = vrot.slane %v231_v23, 4  ;;  %v239_v17 = vrot.slane %v238_v0, 4 }
  0x9b   :  { %v254_v32 = vmul.f32 %v247_v21, %v979_v44  ;;  %v255_v51 = vmul.f32 %v247_v21, %v981_v45  ;;  %v256_v52 = vmul.f32 %v247_v21, %v983_v62  ;;  %v257_v55 = vmul.f32 %v971_v33, %v985_v5 }
  0x9c   :  { %v219_v53 = vadd.f32 %v218_v28, %v217_v22  ;;  %v226_v38 = vadd.f32 %v225_v29, %v224_v16  ;;  %v233_v54 = vadd.f32 %v232_v30, %v231_v23  ;;  %v240_v39 = vadd.f32 %v239_v17, %v238_v0 }
  0x9d   :  { %v258_v40 = vmul.f32 %v971_v33, %v987_v47  ;;  %v259_v56 = vmul.f32 %v971_v33, %v989_v48  ;;  %v260_v12 = vmul.f32 %v971_v33, %v991_v49  ;;  %v261_v41 = vadd.f32 %v257_v55, %v253_v31 }
  0x9e   :  { %v220_v34 = vrot.slane %v219_v53, 2  ;;  %v227_v35 = vrot.slane %v226_v38, 2  ;;  %v234_v36 = vrot.slane %v233_v54, 2  ;;  %v241_v37 = vrot.slane %v240_v39, 2 }
  0x9f   :  { %v268_v57 = vadd.f32 %v258_v40, %v254_v32  ;;  %v275_v58 = vadd.f32 %v259_v56, %v255_v51  ;;  %v282_v59 = vadd.f32 %v260_v12, %v256_v52  ;;  %v344_v42 = vmul.f32 %v335_v18, %v983_v62 }
  0xa0   :  { %v1030_v60 = vadd.f32 %v220_v34, %v219_v53  ;;  %v1032_v61 = vadd.f32 %v227_v35, %v226_v38  ;;  %v1034_v46 = vadd.f32 %v234_v36, %v233_v54  ;;  %v262_v1 = vrot.slane %v261_v41, 4 }
  0xa1   :  { %v291_v63 = vpop.permute.xlu1 %290  ;;  %v269_v2 = vrot.slane %v268_v57, 4  ;;  %v276_v33 = vrot.slane %v275_v58, 4  ;;  %v283_v4 = vrot.slane %v282_v59, 4  ;;  %v1040_v8 = vadd.f32 %v241_v37, %v240_v39 }
  0xa2   :  { %v222_v50 = vrot.slane %v1030_v60, 1  ;;  %v229_v6 = vrot.slane %v1032_v61, 1  ;;  %v236_v7 = vrot.slane %v1034_v46, 1  ;;  %v263_v9 = vadd.f32 %v262_v1, %v261_v41 }
  0xa3   :  { %v270_v10 = vadd.f32 %v269_v2, %v268_v57  ;;  %v277_v13 = vadd.f32 %v276_v33, %v275_v58  ;;  %v284_v11 = vadd.f32 %v283_v4, %v282_v59  ;;  %v297_v14 = vmul.f32 %v291_v63, %v977_v43 }
  0xa4   :  { %v298_v18 = vmul.f32 %v291_v63, %v979_v44  ;;  %v299_v21 = vmul.f32 %v291_v63, %v981_v45  ;;  %v300_v22 = vmul.f32 %v291_v63, %v983_v62  ;;  %v264_v16 = vrot.slane %v263_v9, 2 }
  0xa5   :  { %v271_v23 = vrot.slane %v270_v10, 2  ;;  %v278_v0 = vrot.slane %v277_v13, 2  ;;  %v285_v28 = vrot.slane %v284_v11, 2  ;;  %v305_v29 = vadd.f32 %v301_v15, %v297_v14 }
  0xa6   :  { %v312_v30 = vadd.f32 %v302_v19, %v298_v18  ;;  %v319_v17 = vadd.f32 %v303_v20, %v299_v21  ;;  %v326_v31 = vadd.f32 %v304_v24, %v300_v22  ;;  %v243_v32 = vrot.slane %v1040_v8, 1 }
  0xa7   :  { %v265_v51 = vadd.f32 %v264_v16, %v263_v9  ;;  %v272_v52 = vadd.f32 %v271_v23, %v270_v10  ;;  %v279_v53 = vadd.f32 %v278_v0, %v277_v13  ;;  %v306_v43 = vrot.slane %v305_v29, 4 }
  0xa8   :  { %v313_v38 = vrot.slane %v312_v30, 4  ;;  %v320_v44 = vrot.slane %v319_v17, 4  ;;  %v327_v54 = vrot.slane %v326_v31, 4  ;;  %v286_v55 = vadd.f32 %v285_v28, %v284_v11 }
  0xa9   :  { %v266_v45 = vrot.slane %v265_v51, 1  ;;  %v273_v39 = vrot.slane %v272_v52, 1  ;;  %v280_v62 = vrot.slane %v279_v53, 1  ;;  %v307_v56 = vadd.f32 %v306_v43, %v305_v29 }
  0xaa   :  { %v339_v40 = vpop.permute.xlu1 %338  ;;  %v314_v12 = vadd.f32 %v313_v38, %v312_v30  ;;  %v321_v15 = vadd.f32 %v320_v44, %v319_v17  ;;  %v328_v19 = vadd.f32 %v327_v54, %v326_v31  ;;  %v287_v2 = vrot.slane %v286_v55, 1 }
  0xab   :  { %v345_v20 = vmul.f32 %v339_v40, %v985_v5  ;;  %v346_v24 = vmul.f32 %v339_v40, %v987_v47  ;;  %v347_v34 = vmul.f32 %v339_v40, %v989_v48  ;;  %v348_v35 = vmul.f32 %v339_v40, %v991_v49 }
  0xac   :  { %v308_v36 = vrot.slane %v307_v56, 2  ;;  %v315_v37 = vrot.slane %v314_v12, 2  ;;  %v322_v41 = vrot.slane %v321_v15, 2  ;;  %v329_v57 = vrot.slane %v328_v19, 2 }
  0xad   :  { %v349_v58 = vadd.f32 %v345_v20, %v1010_v25  ;;  %v356_v59 = vadd.f32 %v346_v24, %v1013_v26  ;;  %v363_v63 = vadd.f32 %v347_v34, %v1016_v27  ;;  %v370_v1 = vadd.f32 %v348_v35, %v344_v42  ;;  %v395_v20 = vpop.permute.xlu2 %394 }
  0xae   :  { %v309_v5 = vadd.f32 %v308_v36, %v307_v56  ;;  %v316_v33 = vadd.f32 %v315_v37, %v314_v12  ;;  %v323_v47 = vadd.f32 %v322_v41, %v321_v15  ;;  %v330_v10 = vadd.f32 %v329_v57, %v328_v19 }
  0xaf   :  { %v350_v4 = vrot.slane %v349_v58, 4  ;;  %v357_v48 = vrot.slane %v356_v59, 4  ;;  %v364_v9 = vrot.slane %v363_v63, 4  ;;  %v371_v49 = vrot.slane %v370_v1, 4 }
  0xb0   :  { %v223_v13 = vadd.f32 %v222_v50, %v1030_v60  ;;  %v230_v11 = vadd.f32 %v229_v6, %v1032_v61  ;;  %v237_v25 = vadd.f32 %v236_v7, %v1034_v46  ;;  %v267_v18 = vadd.f32 %v266_v45, %v265_v51 }
  0xb1   :  { %v351_v26 = vadd.f32 %v350_v4, %v349_v58  ;;  %v358_v14 = vadd.f32 %v357_v48, %v356_v59  ;;  %v365_v27 = vadd.f32 %v364_v9, %v363_v63  ;;  %v372_v42 = vadd.f32 %v371_v49, %v370_v1 }
  0xb2   :  { %v274_v21 = vadd.f32 %v273_v39, %v272_v52  ;;  %v281_v22 = vadd.f32 %v280_v62, %v279_v53  ;;  %v288_v16 = vadd.f32 %v287_v2, %v286_v55  ;;  %v310_v30 = vrot.slane %v309_v5, 1 }
  0xb3   :  { %v352_v23 = vrot.slane %v351_v26, 2  ;;  %v359_v0 = vrot.slane %v358_v14, 2  ;;  %v366_v28 = vrot.slane %v365_v27, 2  ;;  %v373_v29 = vrot.slane %v372_v42, 2 }
  0xb4   :  { %v317_v17 = vrot.slane %v316_v33, 1  ;;  %v324_v31 = vrot.slane %v323_v47, 1  ;;  %v331_v60 = vrot.slane %v330_v10, 1  ;;  %v311_v7 = vadd.f32 %v310_v30, %v309_v5 }
  0xb5   :  { %v353_v50 = vadd.f32 %v352_v23, %v351_v26  ;;  %v360_v61 = vadd.f32 %v359_v0, %v358_v14  ;;  %v367_v6 = vadd.f32 %v366_v28, %v365_v27  ;;  %v374_v46 = vadd.f32 %v373_v29, %v372_v42 }
  0xb6   :  { %v318_v43 = vadd.f32 %v317_v17, %v316_v33  ;;  %v325_v38 = vadd.f32 %v324_v31, %v323_v47  ;;  %v332_v44 = vadd.f32 %v331_v60, %v330_v10  ;;  %v244_v45 = vadd.f32 %v243_v32, %v1040_v8 }
  0xb7   :  { %v354_v51 = vrot.slane %v353_v50, 1  ;;  %v361_v52 = vrot.slane %v360_v61, 1  ;;  %v368_v53 = vrot.slane %v367_v6, 1  ;;  %v375_v54 = vrot.slane %v374_v46, 1 }
  0xb8   :  { %v378_v39 = vsel %vm377_vm0, %v223_v13, %v267_v18  ;;  %v379_v62 = vsel %vm377_vm0, %v230_v11, %v274_v21  ;;  %v380_v55 = vsel %vm377_vm0, %v237_v25, %v281_v22  ;;  %v381_v19 = vsel %vm377_vm0, %v244_v45, %v288_v16 }
  0xb9   :  { %v355_v40 = vadd.f32 %v354_v51, %v353_v50  ;;  %v362_v56 = vadd.f32 %v361_v52, %v360_v61  ;;  %v369_v12 = vadd.f32 %v368_v53, %v367_v6  ;;  %v376_v15 = vadd.f32 %v375_v54, %v374_v46 }
  0xba   :  { %v383_v24 = vsel %vm382_vm1, %v378_v39, %v311_v7  ;;  %v384_v8 = vsel %vm382_vm1, %v379_v62, %v318_v43  ;;  %v385_v32 = vsel %vm382_vm1, %v380_v55, %v325_v38  ;;  %v386_v34 = vsel %vm382_vm1, %v381_v19, %v332_v44 }
  0xbb   :  { %v388_v35 = vsel %vm387_vm2, %v383_v24, %v355_v40  ;;  %v389_v36 = vsel %vm387_vm2, %v384_v8, %v362_v56  ;;  %v390_v37 = vsel %vm387_vm2, %v385_v32, %v369_v12  ;;  %v391_v41 = vsel %vm387_vm2, %v386_v34, %v376_v15 }
  0xbc   :  { %v397_v57 = vadd.f32 %v395_v20, %v388_v35  ;;  %v398_v58 = vadd.f32 %v395_v20, %v389_v36  ;;  %v399_v59 = vadd.f32 %v395_v20, %v390_v37  ;;  %v400_v63 = vadd.f32 %v395_v20, %v391_v41 }
  0xbe   :  { %v402_v1 = vsel %vm401_vm3, %v397_v57, -inf  ;;  %v409_v2 = vsel %vm401_vm3, %v398_v58, -inf  ;;  %v416_v5 = vsel %vm401_vm3, %v399_v59, -inf  ;;  %v423_v33 = vsel %vm401_vm3, %v400_v63, -inf }
  0xbf   :  { %v403_v47 = vrot.slane %v402_v1, 4  ;;  %v410_v4 = vrot.slane %v409_v2, 4  ;;  %v417_v48 = vrot.slane %v416_v5, 4  ;;  %v424_v9 = vrot.slane %v423_v33, 4 }
  0xc1   :  { %v404_v49 = vmax.f32 %v402_v1, %v403_v47  ;;  %v411_v10 = vmax.f32 %v409_v2, %v410_v4  ;;  %v418_v13 = vmax.f32 %v416_v5, %v417_v48  ;;  %v425_v11 = vmax.f32 %v423_v33, %v424_v9 }
  0xc3   :  { %v405_v25 = vrot.slane %v404_v49, 2  ;;  %v412_v26 = vrot.slane %v411_v10, 2  ;;  %v419_v14 = vrot.slane %v418_v13, 2  ;;  %v426_v27 = vrot.slane %v425_v11, 2 }
  0xc5   :  { %v406_v42 = vmax.f32 %v404_v49, %v405_v25  ;;  %v413_v18 = vmax.f32 %v411_v10, %v412_v26  ;;  %v420_v21 = vmax.f32 %v418_v13, %v419_v14  ;;  %v427_v22 = vmax.f32 %v425_v11, %v426_v27 }
  0xc7   :  { %v407_v16 = vrot.slane %v406_v42, 1  ;;  %v414_v23 = vrot.slane %v413_v18, 1  ;;  %v421_v0 = vrot.slane %v420_v21, 1  ;;  %v428_v28 = vrot.slane %v427_v22, 1 }
  0xc9   :  { %v408_v29 = vmax.f32 %v406_v42, %v407_v16  ;;  %v415_v30 = vmax.f32 %v413_v18, %v414_v23  ;;  %v422_v17 = vmax.f32 %v420_v21, %v421_v0  ;;  %v429_v31 = vmax.f32 %v427_v22, %v428_v28 }
  0xcb   :  { %v430_v60 = vsub.f32 %v397_v57, %v408_v29  ;;  %v431_v50 = vsub.f32 %v398_v58, %v415_v30  ;;  %v432_v61 = vsub.f32 %v399_v59, %v422_v17  ;;  %v433_v6 = vsub.f32 %v400_v63, %v429_v31 }
  0xcd   :  { %v434_v46 = vmul.f32 1.442695, %v430_v60  ;;  %v436_v7 = vmul.f32 1.442695, %v431_v50  ;;  %v438_v43 = vmul.f32 1.442695, %v432_v61 }
  0xce   :  { %v440_v38 = vmul.f32 1.442695, %v433_v6 }
  0xcf   :  { %810 = vpow2.f32 %v434_v46 }
  0xd0   :  { %812 = vpow2.f32 %v436_v7 }
  0xd1   :  { %814 = vpow2.f32 %v438_v43 }
  0xd2   :  { %816 = vpow2.f32 %v440_v38 }
  0xd5   :  { %v1072_v44 = vpop.eup %810 }
  0xd6   :  { %v1074_v51 = vpop.eup %812  ;;  %v442_v52 = vsel %vm401_vm3, %v1072_v44, 0.0  ;;  %v474_v8 = vrot.slane %v1072_v44, 7  ;;  %vm486_vm4 = vcmp.gt.f32.partialorder %v1072_v44, -inf  ;;  %v490_v36 = vrot.slane %v1072_v44, 1 }
  0xd7   :  { %v1078_v53 = vpop.eup %814  ;;  %v443_v54 = vrot.slane %v442_v52, 4  ;;  %v449_v45 = vsel %vm401_vm3, %v1074_v51, 0.0  ;;  %v475_v35 = vrot.slane %v1074_v51, 7  ;;  %v491_v1 = vrot.slane %v1074_v51, 1 }
  0xd8   :  { %v1082_v39 = vpop.eup %816  ;;  %v450_v62 = vrot.slane %v449_v45, 4  ;;  %v456_v55 = vsel %vm401_vm3, %v1078_v53, 0.0  ;;  %v476_v57 = vrot.slane %v1078_v53, 7  ;;  %v492_v2 = vrot.slane %v1078_v53, 1 }
  0xd9   :  { %v444_v40 = vadd.f32 %v443_v54, %v442_v52  ;;  %v457_v56 = vrot.slane %v456_v55, 4  ;;  %v463_v12 = vsel %vm401_vm3, %v1082_v39, 0.0  ;;  %v477_v58 = vrot.slane %v1082_v39, 7 }
  0xda   :  { %v451_v15 = vadd.f32 %v450_v62, %v449_v45  ;;  %v464_v19 = vrot.slane %v463_v12, 4  ;;  %vm487_vm5 = vcmp.gt.f32.partialorder %v1074_v51, -inf  ;;  %v493_v47 = vrot.slane %v1082_v39, 1 }
  0xdb   :  { %v445_v20 = vrot.slane %v444_v40, 2  ;;  %v458_v24 = vadd.f32 %v457_v56, %v456_v55  ;;  %vm1101_vm6 = vcmp.gt.f32.partialorder %v1072_v44, %v474_v8  ;;  %vm1106_vm7 = vcmp.gt.f32.partialorder %v1074_v51, %v475_v35 }
  0xdc   :  { %v452_v32 = vrot.slane %v451_v15, 2  ;;  %v465_v34 = vadd.f32 %v464_v19, %v463_v12  ;;  %vm1111_vm8 = vcmp.gt.f32.partialorder %v1078_v53, %v476_v57  ;;  %vm1116_vm9 = vcmp.gt.f32.partialorder %v1082_v39, %v477_v58 }
  0xdd   :  { %v446_v37 = vadd.f32 %v445_v20, %v444_v40  ;;  %v459_v41 = vrot.slane %v458_v24, 2  ;;  %vm488_vm10 = vcmp.gt.f32.partialorder %v1078_v53, -inf  ;;  %vm489_vm11 = vcmp.gt.f32.partialorder %v1082_v39, -inf }
  0xde   :  { %v453_v59 = vadd.f32 %v452_v32, %v451_v15  ;;  %v466_v63 = vrot.slane %v465_v34, 2  ;;  %v498_v11 = vmin.f32 %v1072_v44, %v490_v36  ;;  %v1124_v25 = vmin.f32 %v1074_v51, %v491_v1 }
  0xdf   :  { %v447_v5 = vrot.slane %v446_v37, 1  ;;  %v460_v33 = vadd.f32 %v459_v41, %v458_v24  ;;  %v1127_v26 = vmin.f32 %v1078_v53, %v492_v2  ;;  %v502_v14 = vsel %vm486_vm4, 1, %v879_v3 }
  0xe0   :  { %v454_v4 = vrot.slane %v453_v59, 1  ;;  %v1098_v48 = vadd.f32 %v466_v63, %v465_v34  ;;  %v1135_v18 = vmin.f32 %v1082_v39, %v493_v47  ;;  %v503_v21 = vsel %vm487_vm5, 1, %v879_v3 }
  0xe1   :  { %v1132_v27 = vadd.f32 %v447_v5, %v446_v37  ;;  %v461_v42 = vrot.slane %v460_v33, 1  ;;  %v504_v23 = vsel %vm488_vm10, 1, %v879_v3  ;;  %v505_v0 = vsel %vm489_vm11, 1, %v879_v3 }
  0xe2   :  { %v1140_v22 = vadd.f32 %v454_v4, %v453_v59  ;;  %v468_v16 = vrot.slane %v1098_v48, 1  ;;  %v506_v28 = vsel %vm1101_vm6, 0, %v502_v14  ;;  %v514_v29 = vmax.f32 %v1072_v44, %v490_v36 }
  0xe3   :  { %v515_v30 = vmax.f32 %v1074_v51, %v491_v1  ;;  %v516_v17 = vmax.f32 %v1078_v53, %v492_v2  ;;  %v507_v31 = vsel %vm1106_vm7, 0, %v503_v21  ;;  %v517_v60 = vmax.f32 %v1082_v39, %v493_v47 }
  0xe4   :  { %v538_v50 = vrot.slane %v498_v11, 6  ;;  %v539_v61 = vrot.slane %v1124_v25, 6  ;;  %v1154_v6 = vadd.f32 %v461_v42, %v460_v33  ;;  %v508_v46 = vsel %vm1111_vm8, 0, %v504_v23 }
  0xe5   :  { %v509_v7 = vsel %vm1116_vm9, 0, %v505_v0  ;;  %v540_v43 = vrot.slane %v1127_v26, 6  ;;  %v510_v38 = vsel %vm1101_vm6, 1, %v879_v3  ;;  %v511_v52 = vsel %vm1106_vm7, 1, %v879_v3 }
  0xe6   :  { %v512_v54 = vsel %vm1111_vm8, 1, %v879_v3  ;;  %v513_v45 = vsel %vm1116_vm9, 1, %v879_v3  ;;  %v522_v62 = vrot.slane %v514_v29, 6  ;;  %v523_v55 = vrot.slane %v515_v30, 6 }
  0xe7   :  { %v524_v40 = vrot.slane %v516_v17, 6  ;;  %v541_v56 = vrot.slane %v1135_v18, 6  ;;  %v525_v12 = vrot.slane %v517_v60, 6  ;;  %vm1175_vm12 = vcmp.gt.f32.partialorder %v1072_v44, %v538_v50 }
  0xe8   :  { %vm1180_vm13 = vcmp.gt.f32.partialorder %v1074_v51, %v539_v61  ;;  %v550_v20 = vrot.slane %v1072_v44, 2  ;;  %vm1186_vm14 = vcmp.gt.f32.partialorder %v1078_v53, %v540_v43  ;;  %v566_v24 = vrot.slane %v506_v28, 7 }
  0xe9   :  { %v567_v8 = vrot.slane %v507_v31, 7  ;;  %v568_v32 = vrot.slane %v508_v46, 7  ;;  %v551_v34 = vrot.slane %v1074_v51, 2  ;;  %v552_v35 = vrot.slane %v1078_v53, 2 }
  0xea   :  { %v558_v36 = vmin.f32 %v514_v29, %v550_v20  ;;  %v569_v37 = vrot.slane %v509_v7, 7  ;;  %vm1193_vm15 = vcmp.gt.f32.partialorder %v1072_v44, %v522_v62  ;;  %vm1198_vm2 = vcmp.gt.f32.partialorder %v1074_v51, %v523_v55 }
  0xeb   :  { %vm1203_vm4 = vcmp.gt.f32.partialorder %v1082_v39, %v541_v56  ;;  %v553_v59 = vrot.slane %v1082_v39, 2  ;;  %vm1209_vm5 = vcmp.gt.f32.partialorder %v1078_v53, %v524_v40  ;;  %vm1214_vm6 = vcmp.gt.f32.partialorder %v1082_v39, %v525_v12 }
  0xec   :  { %v559_v2 = vmin.f32 %v515_v30, %v551_v34  ;;  %v560_v5 = vmin.f32 %v516_v17, %v552_v35  ;;  %v570_v47 = vsel %vm1175_vm12, 2, %v566_v24  ;;  %v571_v4 = vsel %vm1180_vm13, 2, %v567_v8 }
  0xed   :  { %v561_v33 = vmin.f32 %v517_v60, %v553_v59  ;;  %v572_v9 = vsel %vm1186_vm14, 2, %v568_v32  ;;  %v1224_v49 = vmax.f32 %v498_v11, %v558_v36  ;;  %v573_v10 = vsel %vm1203_vm4, 2, %v569_v37 }
  0xee   :  { %v574_v13 = vrot.slane %v510_v38, 7  ;;  %v575_v14 = vrot.slane %v511_v52, 7  ;;  %v576_v42 = vrot.slane %v512_v54, 7  ;;  %v586_v21 = vmax.f32 %v514_v29, %v550_v20 }
  0xef   :  { %v587_v23 = vmax.f32 %v515_v30, %v551_v34  ;;  %v588_v0 = vmax.f32 %v516_v17, %v552_v35  ;;  %v563_v28 = vmax.f32 %v1124_v25, %v559_v2  ;;  %v564_v31 = vmax.f32 %v1127_v26, %v560_v5 }
  0xf0   :  { %v577_v50 = vrot.slane %v513_v45, 7  ;;  %v589_v61 = vmax.f32 %v517_v60, %v553_v59  ;;  %v1231_v46 = vadd.f32 %v468_v16, %v1098_v48  ;;  %v565_v11 = vmax.f32 %v1135_v18, %v561_v33 }
  0xf1   :  { %v578_v7 = vsel %vm1193_vm15, %v574_v13, %v570_v47  ;;  %v579_v43 = vsel %vm1198_vm2, %v575_v14, %v571_v4  ;;  %v580_v29 = vsel %vm1209_vm5, %v576_v42, %v572_v9  ;;  %v1244_v26 = vsel %vm1193_vm15, 2, %v574_v13 }
  0xf2   :  { %v581_v25 = vsel %vm1214_vm6, %v577_v50, %v573_v10  ;;  %v1248_v48 = vsel %vm1198_vm2, 2, %v575_v14  ;;  %v1252_v18 = vsel %vm1209_vm5, 2, %v576_v42  ;;  %v594_v16 = vrot.slane %v586_v21, 5 }
  0xf3   :  { %v595_v30 = vrot.slane %v587_v23, 5  ;;  %v596_v17 = vrot.slane %v588_v0, 5  ;;  %v597_v60 = vrot.slane %v589_v61, 5  ;;  %v610_v38 = vrot.slane %v1224_v49, 5 }
  0xf4   :  { %v611_v52 = vrot.slane %v563_v28, 5  ;;  %v612_v54 = vrot.slane %v564_v31, 5  ;;  %v622_v45 = vrot.slane %v1072_v44, 3  ;;  %v623_v62 = vrot.slane %v1074_v51, 3 }
  0xf5   :  { %v624_v55 = vrot.slane %v1078_v53, 3  ;;  %v625_v40 = vrot.slane %v1082_v39, 3  ;;  %v585_v56 = vsel %vm1214_vm6, 2, %v577_v50  ;;  %v613_v12 = vrot.slane %v565_v11, 5 }
  0xf6   :  { %v638_v15 = vrot.slane %v578_v7, 7  ;;  %v639_v19 = vrot.slane %v579_v43, 7  ;;  %v630_v20 = vmin.f32 %v586_v21, %v622_v45  ;;  %v631_v3 = vmin.f32 %v587_v23, %v623_v62 }
  0xf7   :  { %v632_v24 = vmin.f32 %v588_v0, %v624_v55  ;;  %v633_v8 = vmin.f32 %v589_v61, %v625_v40  ;;  %vm1262_vm7 = vcmp.gt.f32.partialorder %v1072_v44, %v594_v16  ;;  %vm1267_vm8 = vcmp.gt.f32.partialorder %v1074_v51, %v595_v30 }
  0xf8   :  { %vm618_vm9 = vcmp.gt.f32.partialorder %v1072_v44, %v610_v38  ;;  %vm619_vm10 = vcmp.gt.f32.partialorder %v1074_v51, %v611_v52  ;;  %vm1274_vm11 = vcmp.gt.f32.partialorder %v1078_v53, %v596_v17  ;;  %vm1279_vm12 = vcmp.gt.f32.partialorder %v1082_v39, %v597_v60 }
  0xf9   :  { %vm620_vm13 = vcmp.gt.f32.partialorder %v1078_v53, %v612_v54  ;;  %v640_v37 = vrot.slane %v580_v29, 7  ;;  %vm1285_vm14 = vcmp.gt.f32.partialorder %v1082_v39, %v613_v12  ;;  %v634_v57 = vmax.f32 %v1224_v49, %v630_v20 }
  0xfa   :  { %v635_v58 = vmax.f32 %v563_v28, %v631_v3  ;;  %v636_v59 = vmax.f32 %v564_v31, %v632_v24  ;;  %v637_v63 = vmax.f32 %v565_v11, %v633_v8  ;;  %v641_v1 = vrot.slane %v581_v25, 7 }
  0xfb   :  { %v642_v2 = vsel %vm618_vm9, 3, %v638_v15  ;;  %v643_v5 = vsel %vm619_vm10, 3, %v639_v19  ;;  %v647_v33 = vrot.slane %v1248_v48, 7  ;;  %v658_v47 = vmax.f32 %v586_v21, %v622_v45 }
  0xfc   :  { %v659_v4 = vmax.f32 %v587_v23, %v623_v62  ;;  %v660_v9 = vmax.f32 %v588_v0, %v624_v55  ;;  %v644_v10 = vsel %vm620_vm13, 3, %v640_v37  ;;  %v646_v13 = vrot.slane %v1244_v26, 7 }
  0xfd   :  { %v648_v14 = vrot.slane %v1252_v18, 7  ;;  %v649_v42 = vrot.slane %v585_v56, 7  ;;  %v661_v50 = vmax.f32 %v589_v61, %v625_v40  ;;  %v662_v7 = vadd.f32 %v658_v47, %v634_v57 }
  0xfe   :  { %v663_v49 = vadd.f32 %v659_v4, %v635_v58  ;;  %v664_v28 = vadd.f32 %v660_v9, %v636_v59  ;;  %v666_v31 = vmul.f32 1e-08, %v1132_v27  ;;  %v667_v11 = vmul.f32 1e-08, %v1140_v22 }
  0xff   :  { %v668_v43 = vmul.f32 1e-08, %v1154_v6  ;;  %v690_v29 = vlaneseq  ;;  %v645_v21 = vsel %vm1285_vm14, 3, %v641_v1  ;;  %v655_v23 = vsel %vm1267_vm8, 3, %v647_v33 }
 0x100   :  { %v665_v0 = vadd.f32 %v661_v50, %v637_v63  ;;  %v669_v25 = vmul.f32 1e-08, %v1231_v46  ;;  %v650_v61 = vsel %vm1262_vm7, %v646_v13, %v642_v2  ;;  %v670_v26 = vadd.f32 %v666_v31, %v662_v7 }
 0x101   :  { %v671_v48 = vadd.f32 %v667_v11, %v663_v49  ;;  %v672_v27 = vadd.f32 %v668_v43, %v664_v28  ;;  %v651_v22 = vsel %vm1267_vm8, %v647_v33, %v643_v5  ;;  %v654_v6 = vsel %vm1262_vm7, 3, %v646_v13 }
 0x102   :  { %v1309_v18 = vsel %vm1274_vm11, 3, %v648_v14  ;;  %v673_v16 = vadd.f32 %v669_v25, %v665_v0  ;;  %v657_v46 = vsel %vm1279_vm12, 3, %v649_v42  ;;  %818 = vrcp.f32 %v670_v26 }
 0x103   :  { %v1313_v30 = vshrl.u32 %v690_v29, 7  ;;  %v693_v17 = vperm.slane %v655_v23, 3  ;;  %v652_v60 = vsel %vm1274_vm11, %v648_v14, %v644_v10  ;;  %820 = vrcp.f32 %v671_v48 }
 0x104   :  { %v653_v38 = vsel %vm1279_vm12, %v649_v42, %v645_v21  ;;  %822 = vrcp.f32 %v672_v27  ;;  %v692_v52 = vperm.slane %v654_v6, 3  ;;  %v701_v54 = vperm.slane %v651_v22, 3 }
 0x105   :  { %824 = vrcp.f32 %v673_v16  ;;  %v694_v45 = vperm.slane %v1309_v18, 3  ;;  %v695_v62 = vperm.slane %v657_v46, 3  ;;  %v700_v55 = vperm.slane %v650_v61, 3 }
 0x106   :  { %vm1321_vm15 = vcmp.eq.s32.totalorder %v1313_v30, %v693_v17  ;;  %v702_v56 = vperm.slane %v652_v60, 3  ;;  %v737_v12 = vrot.slane %v655_v23, 3  ;;  %v738_v15 = vrot.slane %v1309_v18, 3 }
 0x107   :  { %v740_v19 = vrot.slane %v650_v61, 2  ;;  %v741_v20 = vrot.slane %v651_v22, 2  ;;  %v742_v3 = vrot.slane %v652_v60, 2  ;;  %v743_v24 = vrot.slane %v653_v38, 2 }
 0x108   :  { %v819_v8 = vpop.eup %818  ;;  %v703_v32 = vperm.slane %v653_v38, 3  ;;  %vm1327_vm2 = vcmp.eq.s32.totalorder %v1313_v30, %v701_v54  ;;  %v736_v35 = vrot.slane %v654_v6, 3  ;;  %v739_v36 = vrot.slane %v657_v46, 3 }
 0x109   :  { %v821_v37 = vpop.eup %820  ;;  %v678_v41 = vmul.f32 %v819_v8, %v670_v26  ;;  %v745_v57 = vsel %vm377_vm0, %v737_v12, %v741_v20  ;;  %v746_v58 = vsel %vm377_vm0, %v738_v15, %v742_v3  ;;  %vm752_vm4 = vcmask 1045508  }
 0x10a   :  { %v823_v59 = vpop.eup %822  ;;  %v679_v63 = vmul.f32 %v821_v37, %v671_v48  ;;  %v747_v1 = vsel %vm377_vm0, %v739_v36, %v743_v24  ;;  %v748_v2 = vrot.slane %v745_v57, 6  ;;  %v749_v5 = vrot.slane %v746_v58, 4 }
 0x10b   :  { %v825_v33 = vpop.eup %824  ;;  %v680_v47 = vmul.f32 %v823_v59, %v672_v27  ;;  %v682_v4 = vsub.f32 2.0, %v678_v41  ;;  %v744_v9 = vsel %vm377_vm0, %v736_v35, %v740_v19  ;;  %v750_v10 = vrot.slane %v747_v1, 2 }
 0x10c   :  { %v681_v13 = vmul.f32 %v825_v33, %v673_v16  ;;  %v683_v14 = vsub.f32 2.0, %v679_v63  ;;  %vm1341_vm5 = vcmp.eq.s32.totalorder %v1313_v30, %v700_v55  ;;  %v751_v50 = vsel %vm382_vm1, %v744_v9, %v748_v2  ;;  %vm709_vm1 = vmor %vm1321_vm15, %vm1327_vm2 }
 0x10d   :  { %v684_v7 = vsub.f32 2.0, %v680_v47  ;;  %v686_v49 = vmul.f32 %v819_v8, %v682_v4  ;;  %vm1347_vm6 = vcmp.eq.s32.totalorder %v1313_v30, %v703_v32  ;;  %v753_v31 = vsel %vm752_vm4, %v749_v5, %v750_v10 }
 0x10e   :  { %v685_v11 = vsub.f32 2.0, %v681_v13  ;;  %v687_v43 = vmul.f32 %v821_v37, %v683_v14  ;;  %vm1354_vm0 = vcmp.eq.s32.totalorder %v1313_v30, %v692_v52  ;;  %v754_v21 = vsel %vm401_vm3, %v751_v50, %v753_v31 }
 0x10f   :  { %v688_v23 = vmul.f32 %v823_v59, %v684_v7  ;;  %vm1364_vm7 = vcmp.eq.s32.totalorder %v1313_v30, %v695_v62  ;;  %vm1369_vm8 = vcmp.eq.s32.totalorder %v1313_v30, %v702_v56  ;;  %vm708_vm9 = vmor %vm1354_vm0, %vm1341_vm5  ;;  %755 = vst [vmem:[#allocation4] sm:$0xff] %v754_v21  ;;  %v716_v26 = vperm.slane %v686_v49, 0 }
 0x110   :  { %v689_v61 = vmul.f32 %v825_v33, %v685_v11  ;;  %vm711_vm10 = vmor %vm1364_vm7, %vm1347_vm6  ;;  %v717_v48 = vperm.slane %v687_v43, 0  ;;  %777 = dma.vmem_to_hbm [thread:$0]  %s773_s4, 128, %s775_s14, [#allocation5]   ;;  %vm698_vm11 = vcmp.eq.s32.totalorder %v1313_v30, %v694_v45  ;;  %v713_v27 = vsel %vm709_vm1, %v1074_v51, 0.0 }
 0x111   :  { %vm710_vm12 = vmor %vm698_vm11, %vm1369_vm8  ;;  %v718_v22 = vperm.slane %v688_v23, 0  ;;  %v712_v16 = vsel %vm708_vm9, %v1072_v44, 0.0  ;;  %v715_v46 = vsel %vm711_vm10, %v1082_v39, 0.0 }
 0x112   :  { %v719_v6 = vperm.slane %v689_v61, 0  ;;  %v721_v18 = vmul.f32 %v717_v48, %v713_v27  ;;  %v720_v17 = vmul.f32 %v716_v26, %v712_v16  ;;  %v714_v51 = vsel %vm710_vm12, %v1078_v53, 0.0 }
 0x113   :  { %v722_v30 = vmul.f32 %v718_v22, %v714_v51 }
 0x114   :  { %v723_v60 = vmul.f32 %v719_v6, %v715_v46  ;;  %v728_v38 = vrot.slane %v721_v18, 4 }
 0x116   :  { %v729_v52 = vrot.slane %v723_v60, 4  ;;  %v730_v54 = vsel %vm401_vm3, %v720_v17, %v728_v38 }
 0x117   :  { %734 = vst [vmem:[#allocation2] sm:$0xff] %v730_v54 }
 0x118   :  { %v731_v44 = vsel %vm401_vm3, %v722_v30, %v729_v52 }
 0x119   :  { %735 = vst [vmem:[#allocation2 + $0x8] sm:$0xff] %v731_v44 }
 0x11a   :  { %766 = dma.vmem_to_hbm [thread:$0]  %s762_s15, 256, %s764_s18, [#allocation3]  }
 0x11b   :  { %874 = dma.done.wait [#allocation3], 256  }
 0x11c   :  { %875 = vsyncadd [#allocation3], 4294967040 }
 0x11d   :  { %876 = dma.done.wait [#allocation5], 128  }
 0x11e   :  { %877 = vsyncadd [#allocation5], 4294967168 }
 0x11f   :  { %786 = vsyncpa [#allocation3], 1 }
 0x120   :  { %787 = vsyncpa [#allocation5], 1 }

</bundles_post_ra>
